<compile_context>
chip_gen: v5e
topology: v5e:2x2
jax: 0.10.0
libtpu: 0.0.40
codegen_flags: <defaults>
</compile_context>

<pallas_src>
import functools

import jax
import jax.numpy as jnp
from jax import lax
from jax.experimental import pallas as pl
from jax.experimental.pallas import tpu as pltpu

LANES = 128


def _round_up(x, m):
    return (x + m - 1) // m * m


def _textcnn_kernel(seq_len, fs_max,
                    code_ref, mconv_ref, bconv_ref, mask_ref,
                    wlin_ref, blin_ref, out_ref):
    """One batch tile of the fused TextCNN forward.

    code_ref : (TB, S, fs_max) int32  shifted token codes, id + k*V_pad
                                      (-1 marks out-of-sequence taps)
    mconv_ref: (fs_max*V_pad, F_pad)  bf16  composed (embedding @ conv) weights
    bconv_ref: (1, F_pad)             f32   fused conv biases
    mask_ref : (S, F_pad)             f32   1.0 on valid conv positions per group
    wlin_ref : (F_pad, C_pad)         bf16  pre-transposed, lane-padded linear w
    blin_ref : (1, C_pad)             f32   lane-padded output bias
    out_ref  : (TB, C_pad)            f32
    """
    TB = code_ref.shape[0]
    C_dim, F_pad = mconv_ref.shape

    # Build the one-hot im2col of the token codes: oh[b, p, c] = 1 iff some tap
    # k has code[b, p, k] == c.  Tap blocks are disjoint (code has +k*V_pad), so
    # a logical-or over the (tiny, statically unrolled) tap loop is exact.
    code = code_ref[...]                                        # (TB, S, fs_max)
    iota_c = lax.broadcasted_iota(jnp.int32, (TB, seq_len, C_dim), 2)
    hit = code[:, :, 0:1] == iota_c
    for k in range(1, fs_max):
        hit = jnp.logical_or(hit, code[:, :, k:k + 1] == iota_c)
    oh = hit.astype(jnp.bfloat16).reshape(TB * seq_len, C_dim)

    # ONE lane-dense MXU matmul: embedding gather + all taps + all filter banks.
    conv = jnp.dot(oh, mconv_ref[...], preferred_element_type=jnp.float32)
    conv = conv.reshape(TB, seq_len, F_pad)

    # conv bias + ReLU on the VPU (f32); zero invalid positions (exact because
    # ReLU output >= 0 and padded columns have zero mask), then max-pool.
    h = jnp.maximum(conv + bconv_ref[...], 0.0) * mask_ref[...]
    pooled = jnp.max(h, axis=1)                                 # (TB, F_pad)

    logits = jnp.dot(pooled.astype(wlin_ref.dtype), wlin_ref[...],
                     preferred_element_type=jnp.float32) + blin_ref[...]
    out_ref[...] = logits                                       # lane-dense store


def _prepare_params(params, *, filter_sizes, num_filters, num_classes,
                    sequence_length):
    """Host-side parameter fusion/padding (tiny, done once)."""
    emb_table, conv_ws, conv_bs, w_lin, bias = params
    V, E = emb_table.shape
    S = sequence_length
    n_sizes = len(filter_sizes)
    F_tot = num_filters * n_sizes
    fs_max = max(filter_sizes)
    V_pad = _round_up(V, LANES)
    F_pad = _round_up(F_tot, LANES)
    C_pad = _round_up(num_classes, LANES)

    table_f32 = emb_table.astype(jnp.float32)
    # Compose embedding lookup with the conv filters (exact in f32, then bf16).
    m = jnp.zeros((fs_max, V_pad, F_pad), jnp.float32)
    for i, fs in enumerate(filter_sizes):
        w_i = conv_ws[i].astype(jnp.float32)                    # (F, fs, E)
        prod = jnp.einsum('ve,fke->kvf', table_f32, w_i)        # (fs, V, F)
        m = m.at[:fs, :V, i * num_filters:(i + 1) * num_filters].set(prod)
    m = m.reshape(fs_max * V_pad, F_pad).astype(jnp.bfloat16)

    b_conv = jnp.zeros((1, F_pad), jnp.float32)
    b_conv = b_conv.at[0, :F_tot].set(
        jnp.concatenate([b.astype(jnp.float32) for b in conv_bs]))

    limits = jnp.concatenate([
        jnp.full((num_filters,), S - fs + 1, jnp.int32) for fs in filter_sizes])
    mask = jnp.zeros((S, F_pad), jnp.float32)
    mask = mask.at[:, :F_tot].set(
        (jnp.arange(S, dtype=jnp.int32)[:, None] < limits[None, :]
         ).astype(jnp.float32))

    w_lin_p = jnp.zeros((F_pad, C_pad), jnp.float32)
    w_lin_p = w_lin_p.at[:F_tot, :num_classes].set(w_lin.astype(jnp.float32).T)
    w_lin_p = w_lin_p.astype(jnp.bfloat16)
    b_lin_p = jnp.zeros((1, C_pad), jnp.float32)
    b_lin_p = b_lin_p.at[0, :num_classes].set(bias.astype(jnp.float32))

    return m, b_conv, mask, w_lin_p, b_lin_p, (V_pad, F_pad, C_pad, fs_max)


def _prepare_token_codes(X, *, fs_max, v_pad):
    """code[b, p, k] = X[b, p+k] + k*v_pad if p+k < S else -1 (never matches)."""
    B, S = X.shape
    X = X.astype(jnp.int32)
    code = jnp.full((B, S, fs_max), -1, jnp.int32)
    for k in range(fs_max):
        valid = S - k
        if valid > 0:
            code = code.at[:, :valid, k].set(X[:, k:k + valid] + k * v_pad)
    return code


def _pick_batch_tile(B, cap):
    """Largest divisor of B <= cap that is sublane-friendly; keep grid >= 2."""
    cap = max(1, min(cap, B))
    if B >= 16:
        cap = min(cap, B // 2)            # v7x has two TensorCores: grid >= 2
    for tb in range(cap, 0, -1):
        if B % tb == 0 and (tb % 8 == 0 or tb == B):
            return tb
    return B


def textcnn_forward(X, params, *, filter_sizes, sequence_length, num_filters,
                    num_classes, batch_tile=256):
    B, S = X.shape
    assert S == sequence_length

    (m, b_conv, mask, w_lin_p, b_lin_p,
     (V_pad, F_pad, C_pad, fs_max)) = _prepare_params(
         params, filter_sizes=filter_sizes, num_filters=num_filters,
         num_classes=num_classes, sequence_length=sequence_length)
    C_dim = fs_max * V_pad
    code = _prepare_token_codes(X, fs_max=fs_max, v_pad=V_pad)

    # ---- batch tile sizing against a VMEM budget safe for v5e/v6e/v7x --------
    per_sample = (S * fs_max * 4 * 2          # code tile, double buffered
                  + S * C_dim * 6             # one-hot bf16 + iota/compare temps
                  + S * F_pad * 4             # conv accumulator f32
                  + F_pad * 4 + C_pad * 4 * 2)  # pooled + logits (double buffered)
    weight_bytes = 2 * (C_dim * F_pad * 2 + F_pad * 4 + S * F_pad * 4
                        + F_pad * C_pad * 2 + C_pad * 4)
    budget = 24 << 20                         # conservative (v7x: 64 MiB physical)
    tb_cap = max(8, int((budget - weight_bytes) // max(per_sample, 1)))
    TB = _pick_batch_tile(B, min(batch_tile, tb_cap))
    vmem_limit = int(min(48 << 20,
                         max(32 << 20, 2 * (weight_bytes + TB * per_sample))))

    kernel = functools.partial(_textcnn_kernel, S, fs_max)

    grid_spec = pltpu.PrefetchScalarGridSpec(
        num_scalar_prefetch=0,
        grid=(B // TB,),
        in_specs=[
            pl.BlockSpec((TB, S, fs_max), lambda i: (i, 0, 0)),   # token codes
            pl.BlockSpec((C_dim, F_pad), lambda i: (0, 0)),       # composed conv w
            pl.BlockSpec((1, F_pad), lambda i: (0, 0)),           # conv bias
            pl.BlockSpec((S, F_pad), lambda i: (0, 0)),           # position mask
            pl.BlockSpec((F_pad, C_pad), lambda i: (0, 0)),       # linear weight
            pl.BlockSpec((1, C_pad), lambda i: (0, 0)),           # linear bias
        ],
        out_specs=pl.BlockSpec((TB, C_pad), lambda i: (i, 0)),
    )

    out_pad = pl.pallas_call(
        kernel,
        out_shape=jax.ShapeDtypeStruct((B, C_pad), jnp.float32),
        grid_spec=grid_spec,
        compiler_params=pltpu.CompilerParams(
            dimension_semantics=("parallel",),
            vmem_limit_bytes=vmem_limit),
    )(code, m, b_conv, mask, w_lin_p, b_lin_p)

    return out_pad[:, :num_classes]


if __name__ == "__main__":
    # Small shapes consistent with the module's forward.
    embedding_size = 8
    sequence_length = 8
    num_classes = 4
    filter_sizes = [2, 3, 4]
    num_filters = 3
    vocab_size = 20
    batch = 16
    num_filters_total = num_filters * len(filter_sizes)

    key = jax.random.PRNGKey(0)
    ks = jax.random.split(key, 8)

    emb_table = jax.random.normal(ks[0], (vocab_size, embedding_size), jnp.float32)
    conv_ws, conv_bs = [], []
    for i, fs in enumerate(filter_sizes):
        conv_ws.append(0.1 * jax.random.normal(
            ks[1 + i], (num_filters, fs, embedding_size), jnp.float32))
        conv_bs.append(0.01 * (jnp.arange(num_filters, dtype=jnp.float32) + i))
    w_lin = 0.1 * jax.random.normal(
        ks[5], (num_classes, num_filters_total), jnp.float32)
    bias = jnp.ones((num_classes,), jnp.float32)      # nn.Parameter(torch.ones)

    X = jax.random.randint(ks[6], (batch, sequence_length), 0, vocab_size,
                           dtype=jnp.int32)

    params = (emb_table, conv_ws, conv_bs, w_lin, bias)
    out = textcnn_forward(X, params,
                          filter_sizes=filter_sizes,
                          sequence_length=sequence_length,
                          num_filters=num_filters,
                          num_classes=num_classes)
    out = jax.block_until_ready(out)

    # Pure-f32 reference of the PyTorch forward (embedding -> conv -> ReLU ->
    # max-pool -> concat -> linear + bias).  The kernel uses bf16 MXU operands
    # (f32 accumulation), hence the modest tolerance.
    emb_ref = emb_table[X]                                         # (B, S, E)
    pooled_ref = []
    for i, fs in enumerate(filter_sizes):
        P = sequence_length - fs + 1
        acc = jnp.zeros((batch, P, num_filters), jnp.float32)
        for k in range(fs):
            acc = acc + jnp.einsum('bpe,fe->bpf',
                                   emb_ref[:, k:k + P, :], conv_ws[i][:, k, :])
        h = jnp.maximum(acc + conv_bs[i][None, None, :], 0.0)
        pooled_ref.append(jnp.max(h, axis=1))
    h_pool = jnp.concatenate(pooled_ref, axis=-1)
    ref = h_pool @ w_lin.T + bias

    assert out.shape == (batch, num_classes), out.shape
    assert jnp.allclose(out, ref, atol=3e-2, rtol=3e-2), (out, ref)
    print("KERNEL_OK")
</pallas_src>

<mosaic_0001>
module attributes {stable_mosaic.version = 11 : i64} {
  func.func @_textcnn_kernel(%arg0: i32, %arg1: memref<8x8x4xi32, #tpu.memory_space<vmem>>, %arg2: memref<512x128xbf16, #tpu.memory_space<vmem>>, %arg3: memref<1x128xf32, #tpu.memory_space<vmem>>, %arg4: memref<8x128xf32, #tpu.memory_space<vmem>>, %arg5: memref<128x128xbf16, #tpu.memory_space<vmem>>, %arg6: memref<1x128xf32, #tpu.memory_space<vmem>>, %arg7: memref<8x128xf32, #tpu.memory_space<vmem>>) attributes {dimension_semantics = [#tpu.dimension_semantics<parallel>], iteration_bounds = array<i64: 2>, scalar_prefetch = 0 : i64, scratch_operands = 0 : i64, tpu.core_type = #tpu.core_type<tc>, window_params = [{transform_indices = @transform_0, window_bounds = array<i64: 8, 8, 4>}, {pipeline_mode = #tpu.pipeline_mode<synchronous>, transform_indices = @transform_1, window_bounds = array<i64: 512, 128>}, {pipeline_mode = #tpu.pipeline_mode<synchronous>, transform_indices = @transform_2, window_bounds = array<i64: 1, 128>}, {pipeline_mode = #tpu.pipeline_mode<synchronous>, transform_indices = @transform_3, window_bounds = array<i64: 8, 128>}, {pipeline_mode = #tpu.pipeline_mode<synchronous>, transform_indices = @transform_4, window_bounds = array<i64: 128, 128>}, {pipeline_mode = #tpu.pipeline_mode<synchronous>, transform_indices = @transform_5, window_bounds = array<i64: 1, 128>}, {transform_indices = @transform_6, window_bounds = array<i64: 8, 128>}]} {
    %c0 = arith.constant 0 : index
    %c0_0 = arith.constant 0 : index
    %c0_1 = arith.constant 0 : index
    %0 = vector.load %arg1[%c0, %c0_0, %c0_1] : memref<8x8x4xi32, #tpu.memory_space<vmem>>, vector<8x8x4xi32>
    %1 = tpu.iota {dimensions = array<i32: 2>} : vector<8x8x512xi32>
    %2 = vector.extract_strided_slice %0 {offsets = [0, 0, 0], sizes = [8, 8, 1], strides = [1, 1, 1]} : vector<8x8x4xi32> to vector<8x8x1xi32>
    %3 = vector.broadcast %2 : vector<8x8x1xi32> to vector<8x8x512xi32>
    %4 = arith.cmpi eq, %3, %1 : vector<8x8x512xi32>
    %5 = vector.extract_strided_slice %0 {offsets = [0, 0, 1], sizes = [8, 8, 1], strides = [1, 1, 1]} : vector<8x8x4xi32> to vector<8x8x1xi32>
    %6 = vector.broadcast %5 : vector<8x8x1xi32> to vector<8x8x512xi32>
    %7 = arith.cmpi eq, %6, %1 : vector<8x8x512xi32>
    %8 = arith.ori %4, %7 : vector<8x8x512xi1>
    %9 = vector.extract_strided_slice %0 {offsets = [0, 0, 2], sizes = [8, 8, 1], strides = [1, 1, 1]} : vector<8x8x4xi32> to vector<8x8x1xi32>
    %10 = vector.broadcast %9 : vector<8x8x1xi32> to vector<8x8x512xi32>
    %11 = arith.cmpi eq, %10, %1 : vector<8x8x512xi32>
    %12 = arith.ori %8, %11 : vector<8x8x512xi1>
    %13 = vector.extract_strided_slice %0 {offsets = [0, 0, 3], sizes = [8, 8, 1], strides = [1, 1, 1]} : vector<8x8x4xi32> to vector<8x8x1xi32>
    %14 = vector.broadcast %13 : vector<8x8x1xi32> to vector<8x8x512xi32>
    %15 = arith.cmpi eq, %14, %1 : vector<8x8x512xi32>
    %16 = arith.ori %12, %15 : vector<8x8x512xi1>
    %17 = arith.extui %16 : vector<8x8x512xi1> to vector<8x8x512xi32>
    %18 = arith.sitofp %17 : vector<8x8x512xi32> to vector<8x8x512xf32>
    %19 = arith.truncf %18 : vector<8x8x512xf32> to vector<8x8x512xbf16>
    %20 = vector.shape_cast %19 : vector<8x8x512xbf16> to vector<64x512xbf16>
    %c0_2 = arith.constant 0 : index
    %c0_3 = arith.constant 0 : index
    %21 = vector.load %arg2[%c0_2, %c0_3] : memref<512x128xbf16, #tpu.memory_space<vmem>>, vector<512x128xbf16>
    %cst = arith.constant dense<0.000000e+00> : vector<64x128xf32>
    %22 = tpu.matmul %20, %21, %cst {dimension_numbers = #tpu.dot_dimension_numbers<[1], [0], [0], [1], [0, 0, 1, 1], [], []>} : vector<64x512xbf16>, vector<512x128xbf16>, vector<64x128xf32> -> vector<64x128xf32>
    %23 = vector.shape_cast %22 : vector<64x128xf32> to vector<8x8x128xf32>
    %c0_4 = arith.constant 0 : index
    %c0_5 = arith.constant 0 : index
    %24 = vector.load %arg3[%c0_4, %c0_5] : memref<1x128xf32, #tpu.memory_space<vmem>>, vector<1x128xf32>
    %25 = vector.shape_cast %24 : vector<1x128xf32> to vector<1x1x128xf32>
    %26 = vector.broadcast %25 : vector<1x1x128xf32> to vector<8x8x128xf32>
    %27 = arith.addf %23, %26 : vector<8x8x128xf32>
    %cst_6 = arith.constant 0.000000e+00 : f32
    %28 = vector.broadcast %cst_6 : f32 to vector<8x8x128xf32>
    %29 = arith.maximumf %27, %28 : vector<8x8x128xf32>
    %c0_7 = arith.constant 0 : index
    %c0_8 = arith.constant 0 : index
    %30 = vector.load %arg4[%c0_7, %c0_8] : memref<8x128xf32, #tpu.memory_space<vmem>>, vector<8x128xf32>
    %31 = vector.shape_cast %30 : vector<8x128xf32> to vector<1x8x128xf32>
    %32 = vector.broadcast %31 : vector<1x8x128xf32> to vector<8x8x128xf32>
    %33 = arith.mulf %29, %32 : vector<8x8x128xf32>
    %cst_9 = arith.constant dense<0xFF800000> : vector<8x128xf32>
    %34 = vector.multi_reduction <maximumf>, %33, %cst_9 [1] : vector<8x8x128xf32> to vector<8x128xf32>
    %35 = arith.truncf %34 : vector<8x128xf32> to vector<8x128xbf16>
    %c0_10 = arith.constant 0 : index
    %c0_11 = arith.constant 0 : index
    %36 = vector.load %arg5[%c0_10, %c0_11] : memref<128x128xbf16, #tpu.memory_space<vmem>>, vector<128x128xbf16>
    %cst_12 = arith.constant dense<0.000000e+00> : vector<8x128xf32>
    %37 = tpu.matmul %35, %36, %cst_12 {dimension_numbers = #tpu.dot_dimension_numbers<[1], [0], [0], [1], [0, 0, 1, 1], [], []>} : vector<8x128xbf16>, vector<128x128xbf16>, vector<8x128xf32> -> vector<8x128xf32>
    %c0_13 = arith.constant 0 : index
    %c0_14 = arith.constant 0 : index
    %38 = vector.load %arg6[%c0_13, %c0_14] : memref<1x128xf32, #tpu.memory_space<vmem>>, vector<1x128xf32>
    %39 = vector.broadcast %38 : vector<1x128xf32> to vector<8x128xf32>
    %40 = arith.addf %37, %39 : vector<8x128xf32>
    %c0_15 = arith.constant 0 : index
    %c0_16 = arith.constant 0 : index
    %41 = vector.load %arg7[%c0_15, %c0_16] : memref<8x128xf32, #tpu.memory_space<vmem>>, vector<8x128xf32>
    tpu.vector_store %arg7[%c0_15, %c0_16], %40 {strides = array<i32>} : memref<8x128xf32, #tpu.memory_space<vmem>>, vector<8x128xf32>,
    return
  }
  func.func @transform_0(%arg0: i32) -> (i32, i32, i32) {
    %c0_i32 = arith.constant 0 : i32
    %c0_i32_0 = arith.constant 0 : i32
    %c0_i32_1 = arith.constant 0 : i32
    return %arg0, %c0_i32, %c0_i32_0 : i32, i32, i32
  }
  func.func @transform_1(%arg0: i32) -> (i32, i32) {
    %c0_i32 = arith.constant 0 : i32
    %c0_i32_0 = arith.constant 0 : i32
    %c0_i32_1 = arith.constant 0 : i32
    return %c0_i32, %c0_i32_0 : i32, i32
  }
  func.func @transform_2(%arg0: i32) -> (i32, i32) {
    %c0_i32 = arith.constant 0 : i32
    %c0_i32_0 = arith.constant 0 : i32
    %c0_i32_1 = arith.constant 0 : i32
    return %c0_i32, %c0_i32_0 : i32, i32
  }
  func.func @transform_3(%arg0: i32) -> (i32, i32) {
    %c0_i32 = arith.constant 0 : i32
    %c0_i32_0 = arith.constant 0 : i32
    %c0_i32_1 = arith.constant 0 : i32
    return %c0_i32, %c0_i32_0 : i32, i32
  }
  func.func @transform_4(%arg0: i32) -> (i32, i32) {
    %c0_i32 = arith.constant 0 : i32
    %c0_i32_0 = arith.constant 0 : i32
    %c0_i32_1 = arith.constant 0 : i32
    return %c0_i32, %c0_i32_0 : i32, i32
  }
  func.func @transform_5(%arg0: i32) -> (i32, i32) {
    %c0_i32 = arith.constant 0 : i32
    %c0_i32_0 = arith.constant 0 : i32
    %c0_i32_1 = arith.constant 0 : i32
    return %c0_i32, %c0_i32_0 : i32, i32
  }
  func.func @transform_6(%arg0: i32) -> (i32, i32) {
    %c0_i32 = arith.constant 0 : i32
    %c0_i32_0 = arith.constant 0 : i32
    return %arg0, %c0_i32 : i32, i32
  }
}

</mosaic_0001>

<bundles_post_ra>
// kernel: tpu_custom_call.1
= control target key start
LH: loop header
LB: loop body
LE: loop exit
PB: predicated region body
PF: predicated region fallthrough
CT: control target
= control target key end

     0   :  { %11 = vsyncpa [#allocation3], 0  ;;  %s2842_s0 = inlined_call_operand.vmem [shape: s32[16,8,4], index: 0, kind: input, shape index: {}]   ;;  %s2843_s1 = inlined_call_operand.hbm [shape: bf16[512,128], index: 1, kind: input, shape index: {}]   ;;  %s2844_s2 = inlined_call_operand.vmem [shape: f32[1,128], index: 2, kind: input, shape index: {}]   ;;  %s2845_s3 = inlined_call_operand.vmem [shape: f32[8,128], index: 3, kind: input, shape index: {}]   ;;  %s2846_s4 = inlined_call_operand.vmem [shape: bf16[128,128], index: 4, kind: input, shape index: {}]   ;;  %s2847_s5 = inlined_call_operand.vmem [shape: f32[1,128], index: 5, kind: input, shape index: {}]   ;;  %s2848_s6 = inlined_call_operand.hbm [shape: f32[16,128], index: 6, kind: output, shape index: {}]  }
   0x1   :  { %12 = vsyncpa [#allocation4], 0 }
   0x2   :  { %14 = vsyncpa [#allocation4 + $0x1], 0  ;;  %s1893_s21 = smov 0   ;;  %s1895_s22 = smov 0  }
   0x3   :  { %s1897_s23 = smov 0   ;;  %s1899_s24 = smov 0  }
   0x4 LB: > { %s1914_s25 = sadd.s32 4294967295, %s1848_s24   ;;  %s1420_s26 = sadd.s32 4294967294, %s1848_s24   ;;  %s1848_s24 = sphi %s1899_s24, %s2998_s24   ;;  %s1844_s23 = sphi %s1897_s23, %s2997_s23   ;;  %s1840_s22 = sphi %s1895_s22, %s2996_s22   ;;  %s1836_s21 = sphi %s1893_s21, %s2995_s21  }
   0x5   : > { %s1918_s27 = sadd.s32 1, %s1848_s24   ;;  %s158_s28 = sadd.s32 1, %s1844_s23 }
   0x6   : > { %s155_s29 = ssub.s32 %s1848_s24, %s1918_s27  ;;  %p168_p0 = scmp.ne.s32.totalorder %s1844_s23, %s1840_s22 }
   0x7   : > { %p156_p1 = scmp.eq.s32.totalorder %s155_s29, 0  ;;  %p169_p2 = scmp.eq.s32.totalorder %s1914_s25, 1 }
   0x8   : > { %p174_p3 = scmp.ne.s32.totalorder %s1840_s22, %s1836_s21  ;;  %p175_p4 = scmp.eq.s32.totalorder %s1420_s26, 1 }
   0x9   : > { %s1929_s30 = scalar_select %p156_p1, %s1844_s23, %s158_s28  }
   0xa   : > { %p1931_p5 = por %p169_p2, %p168_p0  ;;  %p1935_p6 = por %p175_p4, %p174_p3 }
   0xb   : > { %p1421_p7 = scmp.ge.s32.totalorder %s1848_s24, 1  ;;  %p182_p8 = scmp.lt.s32.totalorder %s1848_s24, 3 }
   0xc   : > { %p1679_p9 = scmp.eq.s32.totalorder %s1914_s25, 0  ;;  %s193_s11 = sshll.u32 %s2843_s1, 4  ;;  %s194_s11 = int_to_ptr.hbm [resolvable:$true] %s193_s11 }
   0xd   : > { %p183_p10 = pnand %p1421_p7, %p182_p8  ;;  %s1850_s12 = smov [#allocation2]  }
   0xe   : > { %s195_s13 = sshll.u32 %s1850_s12, 4  ;;  %s1851_s14 = smov 64   ;;  %s196_s13 = int_to_ptr.vmem [resolvable:$true] %s195_s13 }
   0xf   : > { %p1671_p11 = pneg %p183_p10  ;;  %s1852_s15 = smov 4  }
  0x10   : > { %232 = sbr.rel (%p183_p10) target bundleno = 572 (0x23c), region = 44 }
  0x11   : > { %p1672_p12 = pnand %p1679_p9, %p1671_p11 }
  0x13   : > { %1674 = dma.hbm_to_vmem [thread:$0]  (!%p1672_p12), %s194_s11, 4096, %s196_s13, [#allocation3], %s1851_s14, %s1851_s14, %s1852_s15  }
  0x15   : > { %1827 = dma.done.wait (%p1679_p9), [#allocation3], 4096  }
  0x16   : > { %1829 = vsyncadd (%p1679_p9), [#allocation3], 4294963200  ;;  %s1952_s16 = sshll.u32 %s1914_s25, 3  ;;  %v1853_v0 = vmov 3   ;;  %v1854_v1 = vmov 1   ;;  %v1855_v2 = vmov 2   ;;  %v277_v53 = vlaneseq }
  0x17   : > { %1724 = vset.pattern.permute.xlu0 %v1853_v0  ;;  %1722 = vset.pattern.permute.xlu1 %v1854_v1  ;;  %p264_p13 = scmp.lt.s32.totalorder %s1952_s16, 15  ;;  %v1856_v7 = vmov 0   ;;  %v1632_v12 = vld [vmem:[#allocation2 + $0x38] sm:$0xff]  ;;  %v1631_v16 = vld [vmem:[#allocation2 + $0x30] sm:$0xff]  ;;  %v1630_v20 = vld [vmem:[#allocation2 + $0x28] sm:$0xff]  ;;  %v2933_v63 = vmov 0  ;;  %s1344_s15 = scalar_lea.hbm %s2848_s6, %s1952_s16 }
  0x18   : > { %1723 = vset.pattern.permute.xlu2 %v1855_v2  ;;  %v1640_v13 = vld [vmem:[#allocation2 + $0x78] sm:$0xff]  ;;  %1018 = vmatpush.bf16.msra.mxu0 %v1632_v12  ;;  %v1639_v17 = vld [vmem:[#allocation2 + $0x70] sm:$0xff]  ;;  %v1638_v21 = vld [vmem:[#allocation2 + $0x68] sm:$0xff]  ;;  %v2009_v56 = vand.u32 127, %v277_v53  ;;  %v2873_v12 = vmov 0  ;;  %s260_s11 = sand.u32 1, %s1840_s22  }
  0x19   : > { %s265_s17 = scalar_select %p264_p13, %s1952_s16, 15  ;;  %v1648_v14 = vld [vmem:[#allocation2 + $0xb8] sm:$0xff]  ;;  %1047 = vmatpush.bf16.msra.mxu1 %v1640_v13  ;;  %v1647_v18 = vld [vmem:[#allocation2 + $0xb0] sm:$0xff]  ;;  %v1646_v22 = vld [vmem:[#allocation2 + $0xa8] sm:$0xff]  ;;  %v2875_v13 = vmov 0 }
  0x1a   : > { %v1656_v15 = vld [vmem:[#allocation2 + $0xf8] sm:$0xff]  ;;  %1076 = vmatpush.bf16.msra.mxu2 %v1648_v14  ;;  %v1655_v19 = vld [vmem:[#allocation2 + $0xf0] sm:$0xff]  ;;  %v1654_v24 = vld [vmem:[#allocation2 + $0xe8] sm:$0xff]  ;;  %v2014_v58 = vadd.s32 128, %v2009_v56  ;;  %v2017_v59 = vadd.s32 256, %v2009_v56  ;;  %v2021_v60 = vadd.s32 384, %v2009_v56 }
  0x1b   : > { %s1428_s18 = sshll.u32 %s265_s17, 3  ;;  %1105 = vmatpush.bf16.msra.mxu3 %v1656_v15  ;;  %v1629_v25 = vld [vmem:[#allocation2 + $0x20] sm:$0xff]  ;;  %v1628_v30 = vld [vmem:[#allocation2 + $0x18] sm:$0xff]  ;;  %v1627_v37 = vld [vmem:[#allocation2 + $0x10] sm:$0xff]  ;;  %v2877_v15 = vmov 0  ;;  %s1426_s12 = sshll.u32 %s260_s11, 3 }
  0x1c   : > { %s1962_s26 = scalar_lea.vmem %s2842_s0, %s1428_s18  ;;  %1019 = vmatpush.bf16.msra.mxu0 %v1631_v16  ;;  %v1637_v26 = vld [vmem:[#allocation2 + $0x60] sm:$0xff]  ;;  %v1636_v31 = vld [vmem:[#allocation2 + $0x58] sm:$0xff]  ;;  %v1635_v38 = vld [vmem:[#allocation2 + $0x50] sm:$0xff]  ;;  %v2880_v16 = vmov 0  ;;  %s262_s19 = scalar_lea.vmem [#allocation5], %s1426_s12 }
  0x1d   : > { %v269_v3 = vld [vmem:[%s1962_s26] sm:$0xff]  ;;  %v270_v4 = vld [vmem:[%s1962_s26 + $0x8] sm:$0xff]  ;;  %v272_v5 = vld [vmem:[%s1962_s26 + $0x18] sm:$0xff]  ;;  %1048 = vmatpush.bf16.msra.mxu1 %v1639_v17  ;;  %s1346_s20 = sshll.u32 %s262_s19, 4  ;;  %s1334_s25 = scalar_lea.sflag [#allocation4], %s260_s11  ;;  %s1347_s20 = int_to_ptr.vmem [resolvable:$true] %s1346_s20 }
  0x1e   : > { %515 = vperm.xlu0 %1724, %v269_v3   ;;  %339 = vperm.xlu1 %1722, %v269_v3   ;;  %v271_v6 = vld [vmem:[%s1962_s26 + $0x10] sm:$0xff]  ;;  %v273_v8 = vld [vmem:[%s1962_s26 + $0x20] sm:$0xff]  ;;  %v274_v9 = vld [vmem:[%s1962_s26 + $0x28] sm:$0xff]  ;;  %s1802_s10 = scalar_lea.hbm %s2848_s6, 16 }
  0x1f   : > { %427 = vperm.xlu2 %1723, %v269_v3   ;;  %v275_v10 = vld [vmem:[%s1962_s26 + $0x30] sm:$0xff]  ;;  %v276_v11 = vld [vmem:[%s1962_s26 + $0x38] sm:$0xff]  ;;  %1077 = vmatpush.bf16.msra.mxu2 %v1647_v18  ;;  %v1645_v27 = vld [vmem:[#allocation2 + $0xa0] sm:$0xff]  ;;  %v2887_v18 = vmov 0  ;;  %s1348_s26 = sshll.u32 %s1344_s15, 4  ;;  %s1349_s26 = int_to_ptr.hbm [resolvable:$true] %s1348_s26 }
  0x20   : > { %1106 = vmatpush.bf16.msra.mxu3 %v1655_v19  ;;  %1020 = vmatpush.bf16.msra.mxu0 %v1630_v20  ;;  %v1653_v29 = vld [vmem:[#allocation2 + $0xe0] sm:$0xff]  ;;  %v1644_v32 = vld [vmem:[#allocation2 + $0x98] sm:$0xff]  ;;  %v1643_v40 = vld [vmem:[#allocation2 + $0x90] sm:$0xff]  ;;  %s1796_s28 = sshra.s32 %s1349_s26, 4  ;;  %s1797_s28 = int_to_ptr.hbm [resolvable:$true] %s1796_s28 }
  0x21   : > { %1049 = vmatpush.bf16.msra.mxu1 %v1638_v21  ;;  %v1652_v33 = vld [vmem:[#allocation2 + $0xd8] sm:$0xff]  ;;  %v1651_v41 = vld [vmem:[#allocation2 + $0xd0] sm:$0xff]  ;;  %v1626_v42 = vld [vmem:[#allocation2 + $0x8] sm:$0xff]  ;;  %s1798_s29 = scalar_lea.hbm %s1797_s28, 8  ;;  %p1803_p3 = scmp.lt.s32.totalorder %s1797_s28, %s2848_s6 }
  0x22   : > { %v1634_v43 = vld [vmem:[#allocation2 + $0x48] sm:$0xff]  ;;  %v1625_v48 = vld [vmem:[#allocation2] sm:$0xff]  ;;  %p1799_p0 = scmp.ne.s32.totalorder %s1797_s28, %s1798_s29  ;;  %p1804_p4 = scmp.lt.s32.totalorder %s1802_s10, %s1798_s29 }
  0x23   : > { %1078 = vmatpush.bf16.msra.mxu2 %v1646_v22  ;;  %v1642_v44 = vld [vmem:[#allocation2 + $0x88] sm:$0xff]  ;;  %v1633_v49 = vld [vmem:[#allocation2 + $0x40] sm:$0xff]  ;;  %v2899_v22 = vmov 0 }
  0x24   : > { %1107 = vmatpush.bf16.msra.mxu3 %v1654_v24  ;;  %1021 = vmatpush.bf16.msra.mxu0 %v1629_v25  ;;  %v1650_v47 = vld [vmem:[#allocation2 + $0xc8] sm:$0xff]  ;;  %v1641_v50 = vld [vmem:[#allocation2 + $0x80] sm:$0xff]  ;;  %p1800_p1 = pnand %p1799_p0, %p1931_p5  ;;  %p1805_p7 = por %p1804_p4, %p1803_p3 }
  0x25   : > { %1050 = vmatpush.bf16.msra.mxu1 %v1637_v26  ;;  %v1649_v51 = vld [vmem:[#allocation2 + $0xc0] sm:$0xff] }
  0x26   : > { %1729 = vset.pattern.permute.xlu0 %v1854_v1  ;;  %342 = vperm.xlu1 %1722, %v270_v4   ;;  %p1801_p2 = pneg %p1800_p1 }
  0x27   : > { %348 = vperm.xlu0 %1729, %v272_v5   ;;  %430 = vperm.xlu2 %1723, %v270_v4  }
  0x28   : > { %1079 = vmatpush.bf16.msra.mxu2 %v1645_v27  ;;  %1108 = vmatpush.bf16.msra.mxu3 %v1653_v29  ;;  %p1806_p8 = pnand %p1805_p7, %p1801_p2 }
  0x29   : > { %1022 = vmatpush.bf16.msra.mxu0 %v1628_v30  ;;  %1051 = vmatpush.bf16.msra.mxu1 %v1636_v31 }
  0x2c   : > { %1080 = vmatpush.bf16.msra.mxu2 %v1644_v32  ;;  %1109 = vmatpush.bf16.msra.mxu3 %v1652_v33 }
  0x2d   : > { %1023 = vmatpush.bf16.msra.mxu0 %v1627_v37  ;;  %1052 = vmatpush.bf16.msra.mxu1 %v1635_v38 }
  0x2e   : > { %1725 = vset.pattern.permute.xlu1 %v1853_v0 }
  0x2f   : > { %1730 = vset.pattern.permute.xlu0 %v1856_v7  ;;  %518 = vperm.xlu1 %1725, %v270_v4  }
  0x30   : > { %283 = vperm.xlu0 %1730, %v269_v3   ;;  %1726 = vset.pattern.permute.xlu2 %v1856_v7  ;;  %v2857_v3 = vmov 0 }
  0x31   : > { %289 = vperm.xlu2 %1726, %v271_v6   ;;  %1081 = vmatpush.bf16.msra.mxu2 %v1643_v40 }
  0x32   : > { %1110 = vmatpush.bf16.msra.mxu3 %v1651_v41  ;;  %1024 = vmatpush.bf16.msra.mxu0 %v1626_v42  ;;  %v2971_v42 = vmov 0 }
  0x33   : > { %1053 = vmatpush.bf16.msra.mxu1 %v1634_v43 }
  0x35   : > { %1082 = vmatpush.bf16.msra.mxu2 %v1642_v44 }
  0x36   : > { %1111 = vmatpush.bf16.msra.mxu3 %v1650_v47  ;;  %1025 = vmatpush.bf16.msra.mxu0 %v1625_v48 }
  0x37   : > { %1727 = vset.pattern.permute.xlu1 %v1856_v7  ;;  %1054 = vmatpush.bf16.msra.mxu1 %v1633_v49 }
  0x38   : > { %286 = vperm.xlu0 %1730, %v270_v4   ;;  %292 = vperm.xlu1 %1727, %v272_v5   ;;  %v2944_v4 = vmov 0 }
  0x39   : > { %1728 = vset.pattern.permute.xlu2 %v1854_v1  ;;  %1083 = vmatpush.bf16.msra.mxu2 %v1641_v50 }
  0x3a   : > { %345 = vperm.xlu2 %1728, %v271_v6   ;;  %1112 = vmatpush.bf16.msra.mxu3 %v1649_v51  ;;  %v2928_v51 = vmov 0 }
  0x40   : > { %1731 = vset.pattern.permute.xlu1 %v1855_v2  ;;  %295 = vperm.xlu0 %1730, %v273_v8  }
  0x41   : > { %433 = vperm.xlu1 %1731, %v271_v6  }
  0x42   : > { %1732 = vset.pattern.permute.xlu2 %v1855_v2 }
  0x43   : > { %436 = vperm.xlu2 %1732, %v272_v5  }
  0x48   : > { %1739 = vset.pattern.permute.xlu0 %v1855_v2 }
  0x49   : > { %1733 = vset.pattern.permute.xlu1 %v1853_v0  ;;  %442 = vperm.xlu0 %1739, %v274_v9  }
  0x4a   : > { %521 = vperm.xlu1 %1733, %v271_v6   ;;  %v2946_v6 = vmov 0 }
  0x4b   : > { %1734 = vset.pattern.permute.xlu2 %v1853_v0 }
  0x4c   : > { %524 = vperm.xlu2 %1734, %v272_v5  }
  0x51   : > { %1744 = vset.pattern.permute.xlu0 %v1854_v1 }
  0x52   : > { %1735 = vset.pattern.permute.xlu1 %v1856_v7  ;;  %357 = vperm.xlu0 %1744, %v275_v10  }
  0x53   : > { %298 = vperm.xlu1 %1735, %v274_v9  }
  0x54   : > { %1736 = vset.pattern.permute.xlu2 %v1854_v1 }
  0x55   : > { %351 = vperm.xlu2 %1736, %v273_v8  }
  0x5a   : > { %1749 = vset.pattern.permute.xlu0 %v1853_v0 }
  0x5b   : > { %1737 = vset.pattern.permute.xlu1 %v1854_v1  ;;  %536 = vperm.xlu0 %1749, %v276_v11  }
  0x5c   : > { %354 = vperm.xlu1 %1737, %v274_v9  }
  0x5d   : > { %1738 = vset.pattern.permute.xlu2 %v1855_v2 }
  0x5e   : > { %439 = vperm.xlu2 %1738, %v273_v8  }
  0x64   : > { %1740 = vset.pattern.permute.xlu1 %v1853_v0 }
  0x65   : > { %527 = vperm.xlu1 %1740, %v273_v8  }
  0x66   : > { %1741 = vset.pattern.permute.xlu2 %v1853_v0 }
  0x67   : > { %530 = vperm.xlu2 %1741, %v274_v9   ;;  %v2869_v9 = vmov 0 }
  0x6d   : > { %1742 = vset.pattern.permute.xlu1 %v1856_v7 }
  0x6e   : > { %301 = vperm.xlu1 %1742, %v275_v10  }
  0x6f   : > { %1743 = vset.pattern.permute.xlu2 %v1856_v7  ;;  %v2865_v7 = vmov 0 }
  0x70   : > { %304 = vperm.xlu2 %1743, %v276_v11  }
  0x76   : > { %1745 = vset.pattern.permute.xlu1 %v1854_v1 }
  0x77   : > { %360 = vperm.xlu1 %1745, %v276_v11  }
  0x78   : > { %1746 = vset.pattern.permute.xlu2 %v1855_v2 }
  0x79   : > { %445 = vperm.xlu2 %1746, %v275_v10   ;;  %v1989_v23 = vpop.permute.xlu2 %427 }
  0x7a   : > { %vm450_vm12 = vcmp.eq.s32.totalorder %v1989_v23, %v2009_v56  ;;  %vm451_vm15 = vcmp.eq.s32.totalorder %v1989_v23, %v2014_v58 }
  0x7f   : > { %1747 = vset.pattern.permute.xlu1 %v1855_v2  ;;  %v2855_v2 = vmov 0 }
  0x80   : > { %448 = vperm.xlu1 %1747, %v276_v11  }
  0x81   : > { %1748 = vset.pattern.permute.xlu2 %v1853_v0  ;;  %v1993_v28 = vpop.permute.xlu2 %430 }
  0x82   : > { %533 = vperm.xlu2 %1748, %v275_v10   ;;  %v2871_v10 = vmov 0 }
  0x8b   : > { %v1997_v36 = vpop.permute.xlu2 %289 }
  0x90   : > { %v340_v34 = vpop.permute.xlu1 %339  ;;  %v1995_v35 = vpop.permute.xlu0 %515 }
  0x91   : > { %vm362_vm2 = vcmp.eq.s32.totalorder %v340_v34, %v2009_v56  ;;  %vm363_vm4 = vcmp.eq.s32.totalorder %v340_v34, %v2014_v58  ;;  %vm364_vm7 = vcmp.eq.s32.totalorder %v340_v34, %v2017_v59  ;;  %vm365_vm9 = vcmp.eq.s32.totalorder %v340_v34, %v2021_v60 }
  0x94   : > { %v2003_v46 = vpop.permute.xlu2 %345 }
  0x98   : > { %v1999_v39 = vpop.permute.xlu1 %342 }
  0x99   : > { %v2001_v45 = vpop.permute.xlu0 %348 }
  0x9d   : > { %v2007_v55 = vpop.permute.xlu2 %436 }
  0xa1   : > { %v2005_v52 = vpop.permute.xlu1 %518 }
  0xa2   : > { %v284_v54 = vpop.permute.xlu0 %283 }
  0xa3   : > { %vm306_vm0 = vcmp.eq.s32.totalorder %v284_v54, %v2009_v56  ;;  %vm307_vm1 = vcmp.eq.s32.totalorder %v284_v54, %v2014_v58  ;;  %vm308_vm3 = vcmp.eq.s32.totalorder %v284_v54, %v2017_v59  ;;  %vm309_vm5 = vcmp.eq.s32.totalorder %v284_v54, %v2021_v60 }
  0xa4   : > { %vm394_vm6 = vmor %vm306_vm0, %vm362_vm2  ;;  %vm366_vm0 = vcmp.eq.s32.totalorder %v1999_v39, %v2009_v56 }
  0xa5   : > { %vm395_vm8 = vmor %vm307_vm1, %vm363_vm4 }
  0xa6   : > { %v2026_v62 = vpop.permute.xlu2 %524  ;;  %vm2032_vm10 = vmor %vm308_vm3, %vm364_vm7  ;;  %vm367_vm3 = vcmp.eq.s32.totalorder %v1999_v39, %v2014_v58 }
  0xa7   : > { %vm2041_vm13 = vmor %vm309_vm5, %vm365_vm9 }
  0xa8   : > { %vm2050_vm1 = vmor %vm394_vm6, %vm450_vm12  ;;  %vm368_vm6 = vcmp.eq.s32.totalorder %v1999_v39, %v2017_v59  ;;  %vm452_vm12 = vcmp.eq.s32.totalorder %v1989_v23, %v2017_v59 }
  0xa9   : > { %v2856_v2 = vsel %vm2050_vm1, 4294967295, %v2855_v2  ;;  %vm2057_vm4 = vmor %vm395_vm8, %vm451_vm15  ;;  %vm369_vm8 = vcmp.eq.s32.totalorder %v1999_v39, %v2021_v60 }
  0xaa   : > { %v2011_v57 = vpop.permute.xlu1 %292  ;;  %v287_v61 = vpop.permute.xlu0 %286  ;;  %v2858_v3 = vsel %vm2057_vm4, 4294967295, %v2857_v3  ;;  %vm457_vm4 = vcmp.eq.s32.totalorder %v1993_v28, %v2021_v60 }
  0xab   : > { %vm310_vm11 = vcmp.eq.s32.totalorder %v287_v61, %v2009_v56  ;;  %vm311_vm14 = vcmp.eq.s32.totalorder %v287_v61, %v2014_v58  ;;  %vm312_vm2 = vcmp.eq.s32.totalorder %v287_v61, %v2017_v59  ;;  %vm313_vm5 = vcmp.eq.s32.totalorder %v287_v61, %v2021_v60 }
  0xac   : > { %vm2062_vm7 = vmor %vm310_vm11, %vm366_vm0  ;;  %vm453_vm11 = vcmp.eq.s32.totalorder %v1989_v23, %v2021_v60  ;;  %vm454_vm0 = vcmp.eq.s32.totalorder %v1993_v28, %v2009_v56  ;;  %v1857_v23 = vmov 0.0  }
  0xad   : > { %vm2068_vm9 = vmor %vm311_vm14, %vm367_vm3 }
  0xae   : > { %vm2076_vm15 = vmor %vm312_vm2, %vm368_vm6  ;;  %vm455_vm2 = vcmp.eq.s32.totalorder %v1993_v28, %v2014_v58  ;;  %vm456_vm6 = vcmp.eq.s32.totalorder %v1993_v28, %v2017_v59 }
  0xaf   : > { %vm2086_vm14 = vmor %vm2032_vm10, %vm452_vm12  ;;  %v2114_v11 = vpop.permute.xlu2 %351  ;;  %vm371_vm12 = vcmp.eq.s32.totalorder %v2003_v46, %v2014_v58 }
  0xb0   : > { %v2866_v7 = vsel %vm2086_vm14, 4294967295, %v2865_v7  ;;  %vm2090_vm3 = vmor %vm313_vm5, %vm369_vm8  ;;  %vm372_vm8 = vcmp.eq.s32.totalorder %v2003_v46, %v2017_v59  ;;  %vm2883_vm14 = vcmp.eq.s32.totalorder %v1997_v36, %v2009_v56 }
  0xb1   : > { %vm2104_vm10 = vmor %vm2041_vm13, %vm453_vm11  ;;  %vm374_vm13 = vcmp.eq.s32.totalorder %v2001_v45, %v2009_v56 }
  0xb2   : > { %v2870_v9 = vsel %vm2104_vm10, 4294967295, %v2869_v9  ;;  %vm2110_vm5 = vmor %vm2062_vm7, %vm454_vm0  ;;  %vm376_vm0 = vcmp.eq.s32.totalorder %v2001_v45, %v2017_v59  ;;  %vm321_vm7 = vcmp.eq.s32.totalorder %v2011_v57, %v2021_v60  ;;  %vm2882_vm10 = vcmp.eq.s32.totalorder %v2003_v46, %v2009_v56  ;;  %v296_v37 = vpop.permute.xlu0 %295 }
  0xb3   : > { %v2037_v0 = vpop.permute.xlu1 %433  ;;  %v2872_v10 = vsel %vm2110_vm5, 4294967295, %v2871_v10  ;;  %vm2124_vm11 = vmor %vm2068_vm9, %vm455_vm2  ;;  %vm319_vm9 = vcmp.eq.s32.totalorder %v2011_v57, %v2014_v58  ;;  %vm377_vm2 = vcmp.eq.s32.totalorder %v2001_v45, %v2021_v60 }
  0xb4   : > { %v2874_v12 = vsel %vm2124_vm11, 4294967295, %v2873_v12  ;;  %vm2138_vm1 = vmor %vm2076_vm15, %vm456_vm6  ;;  %vm320_vm6 = vcmp.eq.s32.totalorder %v2011_v57, %v2017_v59 }
  0xb5   : > { %v2876_v13 = vsel %vm2138_vm1, 4294967295, %v2875_v13  ;;  %vm2157_vm15 = vmor %vm2090_vm3, %vm457_vm4  ;;  %vm2879_vm4 = vcmp.eq.s32.totalorder %v2011_v57, %v2009_v56  ;;  %vm373_vm1 = vcmp.eq.s32.totalorder %v2003_v46, %v2021_v60 }
  0xb6   : > { %v2878_v15 = vsel %vm2157_vm15, 4294967295, %v2877_v15  ;;  %vm2175_vm3 = vmor %vm2879_vm4, %vm374_vm13  ;;  %vm2886_vm13 = vcmp.eq.s32.totalorder %v2001_v45, %v2014_v58  ;;  %vm2889_vm15 = vcmp.eq.s32.totalorder %v1997_v36, %v2014_v58 }
  0xb7   : > { %v2881_v16 = vsel %vm2175_vm3, 4294967295, %v2880_v16  ;;  %vm2189_vm11 = vmor %vm2883_vm14, %vm2882_vm10  ;;  %vm2894_vm14 = vcmp.eq.s32.totalorder %v1995_v35, %v2009_v56  ;;  %vm2895_vm10 = vnez %v2856_v2 }
  0xb8   : > { %vm2196_vm4 = vmor %vm319_vm9, %vm2886_vm13  ;;  %v2270_v30 = vpop.permute.xlu2 %439 }
  0xb9   : > { %v2888_v18 = vsel %vm2196_vm4, 4294967295, %v2887_v18  ;;  %vm2203_vm3 = vmor %vm2889_vm15, %vm371_vm12  ;;  %vm2896_vm4 = vcmp.eq.s32.totalorder %v1997_v36, %v2017_v59 }
  0xba   : > { %vm2207_vm5 = vmor %vm320_vm6, %vm376_vm0  ;;  %vm542_vm0 = vcmp.eq.s32.totalorder %v2005_v52, %v2009_v56  ;;  %vm2901_vm6 = vcmp.eq.s32.totalorder %v1995_v35, %v2014_v58 }
  0xbb   : > { %vm570_vm9 = vmor %vm2895_vm10, %vm2894_vm14  ;;  %vm2902_vm14 = vnez %v2858_v3  ;;  %v2940_v3 = vmov 0  ;;  %v2437_v8 = vpop.permute.xlu0 %442 }
  0xbc   : > { %v2144_v14 = vpop.permute.xlu1 %521  ;;  %vm2221_vm12 = vmor %vm2896_vm4, %vm372_vm8  ;;  %v1429_v24 = vsel %vm570_vm9, 1.0, %v1857_v23  ;;  %vm541_vm8 = vcmp.eq.s32.totalorder %v1995_v35, %v2021_v60  ;;  %vm2903_vm4 = vcmp.eq.s32.totalorder %v1997_v36, %v2021_v60  ;;  %vm462_vm9 = vcmp.eq.s32.totalorder %v2007_v55, %v2009_v56 }
  0xbd   : > { %vm2227_vm15 = vmor %vm321_vm7, %vm377_vm2  ;;  %vm543_vm7 = vcmp.eq.s32.totalorder %v2005_v52, %v2014_v58  ;;  %vm2906_vm2 = vnez %v2872_v10 }
  0xbe   : > { %v2900_v22 = vsel %vm2227_vm15, 4294967295, %v2899_v22  ;;  %vm571_vm10 = vmor %vm2902_vm14, %vm2901_vm6  ;;  %vm2907_vm14 = vnez %v2874_v12  ;;  %vm2909_vm6 = vnez %v2866_v7 }
  0xbf   : > { %vm2242_vm13 = vmor %vm2903_vm4, %vm373_vm1  ;;  %v1430_v26 = vsel %vm571_vm10, 1.0, %v1857_v23  ;;  %vm544_vm4 = vcmp.eq.s32.totalorder %v2005_v52, %v2017_v59 }
  0xc0   : > { %vm574_vm15 = vmor %vm2906_vm2, %vm542_vm0  ;;  %v666_v28 = vpack.c.bf16 %v1430_v26, %v1429_v24  ;;  %vm545_vm0 = vcmp.eq.s32.totalorder %v2005_v52, %v2021_v60  ;;  %vm2908_vm2 = vcmp.eq.s32.totalorder %v1995_v35, %v2017_v59 }
  0xc1   : > { %vm575_vm1 = vmor %vm2907_vm14, %vm543_vm7  ;;  %v1433_v27 = vsel %vm574_vm15, 1.0, %v1857_v23  ;;  %vm458_vm15 = vcmp.eq.s32.totalorder %v2037_v0, %v2009_v56 }
  0xc2   : > { %v1434_v29 = vsel %vm575_vm1, 1.0, %v1857_v23  ;;  %vm572_vm7 = vmor %vm2909_vm6, %vm2908_vm2  ;;  %vm2910_vm1 = vnez %v2870_v9  ;;  %vm460_vm6 = vcmp.eq.s32.totalorder %v2037_v0, %v2017_v59  ;;  %v762_v34 = vunpack.c.l.b16 %v666_v28 }
  0xc3   : > { %v668_v31 = vpack.c.bf16 %v1434_v29, %v1433_v27  ;;  %vm573_vm10 = vmor %vm2910_vm1, %vm541_vm8  ;;  %v1431_v32 = vsel %vm572_vm7, 1.0, %v1857_v23  ;;  %v763_v36 = vunpack.c.h.b16 %v666_v28  ;;  %vm2911_vm2 = vnez %v2876_v13 }
  0xc4   : > { %vm576_vm14 = vmor %vm2911_vm2, %vm544_vm4  ;;  %v1432_v35 = vsel %vm573_vm10, 1.0, %v1857_v23  ;;  %vm2912_vm8 = vnez %v2878_v15  ;;  %vm465_vm1 = vcmp.eq.s32.totalorder %v2007_v55, %v2021_v60  ;;  %vm461_vm10 = vcmp.eq.s32.totalorder %v2037_v0, %v2021_v60 }
  0xc5   : > { %v2282_v33 = vpop.permute.xlu1 %298  ;;  %v766_v38 = vunpack.c.l.b16 %v668_v31  ;;  %v767_v39 = vunpack.c.h.b16 %v668_v31  ;;  %vm577_vm7 = vmor %vm2912_vm8, %vm545_vm0  ;;  %v1435_v40 = vsel %vm576_vm14, 1.0, %v1857_v23  ;;  %v667_v41 = vpack.c.bf16 %v1432_v35, %v1431_v32 }
  0xc6   : > { %vm2309_vm2 = vmor %vm2189_vm11, %vm458_vm15  ;;  %v1436_v43 = vsel %vm577_vm7, 1.0, %v1857_v23  ;;  %vm2915_vm0 = vnez %v2881_v16  ;;  %vm2918_vm8 = vcmp.eq.s32.totalorder %v2037_v0, %v2014_v58  ;;  %vm2922_vm7 = vnez %v2888_v18 }
  0xc7   : > { %vm2319_vm14 = vmor %vm2915_vm0, %vm462_vm9  ;;  %v794_v46 = vpack.c.b16 %v766_v38, %v762_v34  ;;  %v795_v47 = vpack.c.b16 %v767_v39, %v763_v36  ;;  %v669_v48 = vpack.c.bf16 %v1436_v43, %v1435_v40  ;;  %vm2921_vm9 = vcmp.eq.s32.totalorder %v2007_v55, %v2014_v58 }
  0xc8   : > { %vm2328_vm11 = vmor %vm2203_vm3, %vm2918_vm8  ;;  %vm2927_vm4 = vcmp.eq.s32.totalorder %v2007_v55, %v2017_v59  ;;  %v764_v53 = vunpack.c.l.b16 %v667_v41  ;;  %v765_v57 = vunpack.c.h.b16 %v667_v41  ;;  %v2937_v0 = vmov 0  ;;  %v2396_v55 = vpop.permute.xlu2 %530 }
  0xc9   : > { %vm2338_vm0 = vmor %vm2922_vm7, %vm2921_vm9  ;;  %vm323_vm9 = vcmp.eq.s32.totalorder %v296_v37, %v2014_v58  ;;  %1026 = vmatmul.bf16.vlgmr.msra.gmra.mxu0 %v794_v46  ;;  %1055 = vmatmul.bf16.vlgmr.msra.gmra.mxu1 %v795_v47  ;;  %v768_v54 = vunpack.c.l.b16 %v669_v48  ;;  %v769_v61 = vunpack.c.h.b16 %v669_v48  ;;  %vm2936_vm7 = vcmp.eq.s32.totalorder %v296_v37, %v2009_v56  ;;  %v358_v47 = vpop.permute.xlu0 %357 }
  0xca   : > { %vm2351_vm15 = vmor %vm2221_vm12, %vm460_vm6 }
  0xcb   : > { %vm2362_vm3 = vmor %vm2207_vm5, %vm2927_vm4  ;;  %vm2932_vm5 = vnez %v2900_v22  ;;  %vm325_vm4 = vcmp.eq.s32.totalorder %v296_v37, %v2021_v60  ;;  %v796_v1 = vpack.c.b16 %v768_v54, %v764_v53  ;;  %v797_v2 = vpack.c.b16 %v769_v61, %v765_v57 }
  0xcc   : > { %v2929_v51 = vsel %vm2362_vm3, 4294967295, %v2928_v51  ;;  %vm2371_vm12 = vmor %vm2242_vm13, %vm461_vm10  ;;  %vm381_vm13 = vcmp.eq.s32.totalorder %v2114_v11, %v2021_v60  ;;  %vm2935_vm10 = vcmp.eq.s32.totalorder %v2114_v11, %v2009_v56  ;;  %vm547_vm3 = vcmp.eq.s32.totalorder %v2144_v14, %v2014_v58 }
  0xcd   : > { %vm2380_vm6 = vmor %vm2932_vm5, %vm465_vm1  ;;  %vm2939_vm1 = vcmp.eq.s32.totalorder %v2114_v11, %v2014_v58  ;;  %1084 = vmatmul.bf16.vlgmr.msra.gmra.mxu2 %v796_v1  ;;  %1113 = vmatmul.bf16.vlgmr.msra.gmra.mxu3 %v797_v2 }
  0xce   : > { %v2934_v63 = vsel %vm2380_vm6, 4294967295, %v2933_v63  ;;  %vm2392_vm8 = vmor %vm2936_vm7, %vm2935_vm10  ;;  %vm546_vm6 = vcmp.eq.s32.totalorder %v2144_v14, %v2009_v56  ;;  %vm2942_vm7 = vcmp.eq.s32.totalorder %v2114_v11, %v2017_v59  ;;  %vm2943_vm10 = vcmp.eq.s32.totalorder %v296_v37, %v2017_v59  ;;  %v2420_v5 = vpop.permute.xlu1 %354 }
  0xcf   : > { %v2938_v0 = vsel %vm2392_vm8, 4294967295, %v2937_v0  ;;  %vm2403_vm5 = vmor %vm323_vm9, %vm2939_vm1  ;;  %vm548_vm1 = vcmp.eq.s32.totalorder %v2144_v14, %v2017_v59 }
  0xd0   : > { %v2941_v3 = vsel %vm2403_vm5, 4294967295, %v2940_v3  ;;  %vm2414_vm8 = vmor %vm2943_vm10, %vm2942_vm7  ;;  %vm549_vm7 = vcmp.eq.s32.totalorder %v2144_v14, %v2021_v60  ;;  %v2489_v16 = vpop.permute.xlu2 %304 }
  0xd1   : > { %v2945_v4 = vsel %vm2414_vm8, 4294967295, %v2944_v4  ;;  %vm2422_vm9 = vmor %vm325_vm4, %vm381_vm13  ;;  %vm550_vm8 = vcmp.eq.s32.totalorder %v2026_v62, %v2009_v56  ;;  %vm551_vm13 = vcmp.eq.s32.totalorder %v2026_v62, %v2014_v58  ;;  %vm552_vm4 = vcmp.eq.s32.totalorder %v2026_v62, %v2017_v59  ;;  %v537_v24 = vpop.permute.xlu0 %536 }
  0xd2   : > { %v2947_v6 = vsel %vm2422_vm9, 4294967295, %v2946_v6  ;;  %vm578_vm10 = vmor %vm2309_vm2, %vm546_vm6  ;;  %vm553_vm9 = vcmp.eq.s32.totalorder %v2026_v62, %v2021_v60 }
  0xd3   : > { %vm579_vm5 = vmor %vm2328_vm11, %vm547_vm3  ;;  %v1437_v7 = vsel %vm578_vm10, 1.0, %v1857_v23  ;;  %vm466_vm11 = vcmp.eq.s32.totalorder %v2270_v30, %v2009_v56  ;;  %vm467_vm3 = vcmp.eq.s32.totalorder %v2270_v30, %v2014_v58  ;;  %vm468_vm10 = vcmp.eq.s32.totalorder %v2270_v30, %v2017_v59 }
  0xd4   : > { %vm580_vm2 = vmor %vm2351_vm15, %vm548_vm1  ;;  %v1438_v9 = vsel %vm579_vm5, 1.0, %v1857_v23  ;;  %vm469_vm15 = vcmp.eq.s32.totalorder %v2270_v30, %v2021_v60  ;;  %vm326_vm1 = vcmp.eq.s32.totalorder %v2282_v33, %v2009_v56 }
  0xd5   : > { %vm581_vm6 = vmor %vm2371_vm12, %vm549_vm7  ;;  %v670_v10 = vpack.c.bf16 %v1438_v9, %v1437_v7  ;;  %v1439_v11 = vsel %vm580_vm2, 1.0, %v1857_v23  ;;  %vm2948_vm2 = vnez %v2929_v51  ;;  %vm328_vm12 = vcmp.eq.s32.totalorder %v2282_v33, %v2017_v59 }
  0xd6   : > { %vm582_vm5 = vmor %vm2319_vm14, %vm550_vm8  ;;  %v1440_v12 = vsel %vm581_vm6, 1.0, %v1857_v23  ;;  %vm382_vm14 = vcmp.eq.s32.totalorder %v2420_v5, %v2009_v56  ;;  %vm327_vm8 = vcmp.eq.s32.totalorder %v2282_v33, %v2014_v58 }
  0xd7   : > { %vm583_vm7 = vmor %vm2338_vm0, %vm551_vm13  ;;  %v1441_v13 = vsel %vm582_vm5, 1.0, %v1857_v23  ;;  %v671_v14 = vpack.c.bf16 %v1440_v12, %v1439_v11  ;;  %vm383_vm0 = vcmp.eq.s32.totalorder %v2420_v5, %v2014_v58  ;;  %vm384_vm13 = vcmp.eq.s32.totalorder %v2420_v5, %v2017_v59  ;;  %v528_v22 = vpop.permute.xlu1 %527 }
  0xd8   : > { %v1442_v15 = vsel %vm583_vm7, 1.0, %v1857_v23  ;;  %vm584_vm6 = vmor %vm2948_vm2, %vm552_vm4  ;;  %vm2949_vm5 = vnez %v2938_v0  ;;  %v770_v19 = vunpack.c.l.b16 %v670_v10  ;;  %v771_v20 = vunpack.c.h.b16 %v670_v10  ;;  %v2607_v45 = vpop.permute.xlu2 %445 }
  0xd9   : > { %vm2496_vm7 = vmor %vm2949_vm5, %vm466_vm11  ;;  %v672_v18 = vpack.c.bf16 %v1442_v15, %v1441_v13  ;;  %vm2952_vm4 = vnez %v2934_v63  ;;  %v1443_v21 = vsel %vm584_vm6, 1.0, %v1857_v23  ;;  %vm2953_vm11 = vnez %v2941_v3 }
  0xda   : > { %vm585_vm2 = vmor %vm2952_vm4, %vm553_vm9  ;;  %v772_v25 = vunpack.c.l.b16 %v671_v14  ;;  %vm385_vm9 = vcmp.eq.s32.totalorder %v2420_v5, %v2021_v60  ;;  %v773_v32 = vunpack.c.h.b16 %v671_v14 }
  0xdb   : > { %vm2511_vm5 = vmor %vm2953_vm11, %vm467_vm3  ;;  %v1444_v62 = vsel %vm585_vm2, 1.0, %v1857_v23  ;;  %vm2958_vm3 = vnez %v2945_v4  ;;  %v774_v28 = vunpack.c.l.b16 %v672_v18  ;;  %v775_v29 = vunpack.c.h.b16 %v672_v18 }
  0xdc   : > { %vm2526_vm6 = vmor %vm326_vm1, %vm382_vm14  ;;  %v673_v31 = vpack.c.bf16 %v1444_v62, %v1443_v21  ;;  %vm329_vm2 = vcmp.eq.s32.totalorder %v2282_v33, %v2021_v60  ;;  %v2983_v18 = vmov 0 }
  0xdd   : > { %vm2535_vm4 = vmor %vm2958_vm3, %vm468_vm10  ;;  %vm2963_vm10 = vnez %v2947_v6  ;;  %v798_v30 = vpack.c.b16 %v774_v28, %v770_v19  ;;  %v799_v37 = vpack.c.b16 %v775_v29, %v771_v20  ;;  %v2985_v19 = vmov 0 }
  0xde   : > { %vm2545_vm1 = vmor %vm327_vm8, %vm383_vm0  ;;  %vm471_vm8 = vcmp.eq.s32.totalorder %v2437_v8, %v2014_v58  ;;  %vm472_vm0 = vcmp.eq.s32.totalorder %v2437_v8, %v2017_v59  ;;  %v776_v38 = vunpack.c.l.b16 %v673_v31  ;;  %v777_v39 = vunpack.c.h.b16 %v673_v31 }
  0xdf   : > { %vm2554_vm14 = vmor %vm2963_vm10, %vm469_vm15  ;;  %1031 = vmatmul.bf16.gmra.mxu0 %v798_v30  ;;  %1060 = vmatmul.bf16.gmra.mxu1 %v799_v37  ;;  %v2987_v20 = vmov 0 }
  0xe0   : > { %vm2563_vm11 = vmor %vm328_vm12, %vm384_vm13  ;;  %vm473_vm12 = vcmp.eq.s32.totalorder %v2437_v8, %v2021_v60  ;;  %vm2968_vm13 = vcmp.eq.s32.totalorder %v2437_v8, %v2009_v56  ;;  %v800_v40 = vpack.c.b16 %v776_v38, %v772_v25  ;;  %v801_v41 = vpack.c.b16 %v777_v39, %v773_v32  ;;  %v302_v46 = vpop.permute.xlu1 %301  ;;  %v534_v10 = vpop.permute.xlu2 %533 }
  0xe1   : > { %vm417_vm15 = vmor %vm329_vm2, %vm385_vm9  ;;  %vm554_vm9 = vcmp.eq.s32.totalorder %v528_v22, %v2009_v56 }
  0xe2   : > { %vm2581_vm3 = vmor %vm2526_vm6, %vm2968_vm13  ;;  %vm555_vm6 = vcmp.eq.s32.totalorder %v528_v22, %v2014_v58  ;;  %1089 = vmatmul.bf16.gmra.mxu2 %v800_v40  ;;  %1118 = vmatmul.bf16.gmra.mxu3 %v801_v41 }
  0xe3   : > { %vm2587_vm10 = vmor %vm2545_vm1, %vm471_vm8  ;;  %vm556_vm1 = vcmp.eq.s32.totalorder %v528_v22, %v2017_v59  ;;  %vm557_vm8 = vcmp.eq.s32.totalorder %v528_v22, %v2021_v60  ;;  %v2989_v22 = vmov 0 }
  0xe4   : > { %v2972_v42 = vsel %vm2587_vm10, 4294967295, %v2971_v42  ;;  %vm2594_vm2 = vmor %vm2563_vm11, %vm472_vm0  ;;  %vm558_vm11 = vcmp.eq.s32.totalorder %v2396_v55, %v2009_v56 }
  0xe5   : > { %vm2599_vm13 = vmor %vm417_vm15, %vm473_vm12  ;;  %vm559_vm15 = vcmp.eq.s32.totalorder %v2396_v55, %v2014_v58 }
  0xe6   : > { %vm586_vm10 = vmor %vm2496_vm7, %vm554_vm9  ;;  %vm560_vm7 = vcmp.eq.s32.totalorder %v2396_v55, %v2017_v59 }
  0xe7   : > { %vm587_vm0 = vmor %vm2511_vm5, %vm555_vm6  ;;  %v1445_v48 = vsel %vm586_vm10, 1.0, %v1857_v23  ;;  %vm561_vm5 = vcmp.eq.s32.totalorder %v2396_v55, %v2021_v60  ;;  %vm386_vm6 = vcmp.eq.s32.totalorder %v358_v47, %v2009_v56 }
  0xe8   : > { %vm588_vm12 = vmor %vm2535_vm4, %vm556_vm1  ;;  %v1446_v49 = vsel %vm587_vm0, 1.0, %v1857_v23  ;;  %vm388_vm1 = vcmp.eq.s32.totalorder %v358_v47, %v2017_v59  ;;  %vm330_vm0 = vcmp.eq.s32.totalorder %v302_v46, %v2009_v56  ;;  %vm331_vm4 = vcmp.eq.s32.totalorder %v302_v46, %v2014_v58 }
  0xe9   : > { %vm589_vm9 = vmor %vm2554_vm14, %vm557_vm8  ;;  %v674_v50 = vpack.c.bf16 %v1446_v49, %v1445_v48  ;;  %v1447_v51 = vsel %vm588_vm12, 1.0, %v1857_v23  ;;  %vm2977_vm14 = vnez %v2972_v42  ;;  %vm389_vm12 = vcmp.eq.s32.totalorder %v358_v47, %v2021_v60  ;;  %v361_v9 = vpop.permute.xlu1 %360 }
  0xea   : > { %vm590_vm10 = vmor %vm2581_vm3, %vm558_vm11  ;;  %v1448_v52 = vsel %vm589_vm9, 1.0, %v1857_v23  ;;  %vm332_vm3 = vcmp.eq.s32.totalorder %v302_v46, %v2017_v59  ;;  %vm474_vm9 = vcmp.eq.s32.totalorder %v2607_v45, %v2009_v56 }
  0xeb   : > { %vm591_vm8 = vmor %vm2977_vm14, %vm559_vm15  ;;  %v1449_v53 = vsel %vm590_vm10, 1.0, %v1857_v23  ;;  %v675_v54 = vpack.c.bf16 %v1448_v52, %v1447_v51  ;;  %v778_v63 = vunpack.c.l.b16 %v674_v50  ;;  %v779_v0 = vunpack.c.h.b16 %v674_v50 }
  0xec   : > { %v1450_v57 = vsel %vm591_vm8, 1.0, %v1857_v23  ;;  %vm592_vm11 = vmor %vm2594_vm2, %vm560_vm7  ;;  %vm333_vm10 = vcmp.eq.s32.totalorder %v302_v46, %v2021_v60  ;;  %vm477_vm14 = vcmp.eq.s32.totalorder %v2607_v45, %v2021_v60 }
  0xed   : > { %v676_v61 = vpack.c.bf16 %v1450_v57, %v1449_v53  ;;  %vm593_vm15 = vmor %vm2599_vm13, %vm561_vm5  ;;  %v1451_v1 = vsel %vm592_vm11, 1.0, %v1857_v23  ;;  %v780_v3 = vunpack.c.l.b16 %v675_v54  ;;  %v781_v7 = vunpack.c.h.b16 %v675_v54 }
  0xee   : > { %v1452_v2 = vsel %vm593_vm15, 1.0, %v1857_v23  ;;  %vm2662_vm2 = vmor %vm330_vm0, %vm386_vm6  ;;  %vm2980_vm13 = vcmp.eq.s32.totalorder %v358_v47, %v2014_v58  ;;  %vm475_vm5 = vcmp.eq.s32.totalorder %v2607_v45, %v2014_v58  ;;  %vm476_vm6 = vcmp.eq.s32.totalorder %v2607_v45, %v2017_v59 }
  0xef   : > { %v782_v55 = vunpack.c.l.b16 %v676_v61  ;;  %v783_v5 = vunpack.c.h.b16 %v676_v61  ;;  %v677_v6 = vpack.c.bf16 %v1452_v2, %v1451_v1  ;;  %vm2670_vm7 = vmor %vm331_vm4, %vm2980_vm13  ;;  %vm563_vm11 = vcmp.eq.s32.totalorder %v534_v10, %v2014_v58 }
  0xf0   : > { %vm420_vm0 = vmor %vm332_vm3, %vm388_vm1 }
  0xf1   : > { %v802_v11 = vpack.c.b16 %v782_v55, %v778_v63  ;;  %v803_v12 = vpack.c.b16 %v783_v5, %v779_v0  ;;  %v784_v13 = vunpack.c.l.b16 %v677_v6  ;;  %v785_v14 = vunpack.c.h.b16 %v677_v6  ;;  %vm421_vm4 = vmor %vm333_vm10, %vm389_vm12  ;;  %v1664_v0 = vld [vmem:[%s2846_s4 + $0x38] sm:$0xff] }
  0xf2   : > { %vm506_vm8 = vmor %vm2662_vm2, %vm474_vm9  ;;  %vm562_vm12 = vcmp.eq.s32.totalorder %v534_v10, %v2009_v56  ;;  %vm564_vm9 = vcmp.eq.s32.totalorder %v534_v10, %v2017_v59  ;;  %vm565_vm10 = vcmp.eq.s32.totalorder %v534_v10, %v2021_v60  ;;  %v449_v21 = vpop.permute.xlu1 %448  ;;  %1319 = vmatpush.bf16.msrb.mxu0 %v1664_v0 }
  0xf3   : > { %1036 = vmatmul.bf16.gmra.mxu0 %v802_v11  ;;  %1065 = vmatmul.bf16.gmra.mxu1 %v803_v12  ;;  %v804_v15 = vpack.c.b16 %v784_v13, %v780_v3  ;;  %v805_v17 = vpack.c.b16 %v785_v14, %v781_v7  ;;  %vm507_vm1 = vmor %vm2670_vm7, %vm475_vm5  ;;  %vm390_vm7 = vcmp.eq.s32.totalorder %v361_v9, %v2009_v56  ;;  %v1662_v14 = vld [vmem:[%s2846_s4 + $0x28] sm:$0xff] }
  0xf4   : > { %vm508_vm3 = vmor %vm420_vm0, %vm476_vm6  ;;  %vm391_vm6 = vcmp.eq.s32.totalorder %v361_v9, %v2014_v58  ;;  %vm334_vm0 = vcmp.eq.s32.totalorder %v2489_v16, %v2009_v56 }
  0xf5   : > { %1094 = vmatmul.bf16.gmra.mxu2 %v804_v15  ;;  %1123 = vmatmul.bf16.gmra.mxu3 %v805_v17  ;;  %vm509_vm15 = vmor %vm421_vm4, %vm477_vm14  ;;  %vm392_vm14 = vcmp.eq.s32.totalorder %v361_v9, %v2017_v59 }
  0xf6   : > { %vm2705_vm2 = vmor %vm506_vm8, %vm562_vm12  ;;  %vm335_vm8 = vcmp.eq.s32.totalorder %v2489_v16, %v2014_v58 }
  0xf7   : > { %v2984_v18 = vsel %vm2705_vm2, 4294967295, %v2983_v18  ;;  %vm2709_vm13 = vmor %vm507_vm1, %vm563_vm11  ;;  %vm393_vm1 = vcmp.eq.s32.totalorder %v361_v9, %v2021_v60  ;;  %vm481_vm2 = vcmp.eq.s32.totalorder %v449_v21, %v2021_v60  ;;  %v1663_v9 = vld [vmem:[%s2846_s4 + $0x30] sm:$0xff] }
  0xf8   : > { %v2986_v19 = vsel %vm2709_vm13, 4294967295, %v2985_v19  ;;  %vm2714_vm5 = vmor %vm508_vm3, %vm564_vm9  ;;  %vm336_vm3 = vcmp.eq.s32.totalorder %v2489_v16, %v2017_v59  ;;  %vm478_vm9 = vcmp.eq.s32.totalorder %v449_v21, %v2009_v56  ;;  %vm480_vm13 = vcmp.eq.s32.totalorder %v449_v21, %v2017_v59  ;;  %1320 = vmatpush.bf16.msrb.mxu0 %v1663_v9 }
  0xf9   : > { %v2988_v20 = vsel %vm2714_vm5, 4294967295, %v2987_v20  ;;  %vm2721_vm4 = vmor %vm509_vm15, %vm565_vm10  ;;  %vm337_vm15 = vcmp.eq.s32.totalorder %v2489_v16, %v2021_v60 }
  0xfa   : > { %v2990_v22 = vsel %vm2721_vm4, 4294967295, %v2989_v22  ;;  %vm422_vm12 = vmor %vm334_vm0, %vm390_vm7  ;;  %vm479_vm4 = vcmp.eq.s32.totalorder %v449_v21, %v2014_v58  ;;  %vm2991_vm7 = vnez %v2984_v18 }
  0xfb   : > { %vm423_vm11 = vmor %vm335_vm8, %vm391_vm6  ;;  %v1453_v62 = vsel %vm2991_vm7, 1.0, %v1857_v23  ;;  %vm2992_vm6 = vnez %v2986_v19  ;;  %vm568_vm7 = vcmp.eq.s32.totalorder %v537_v24, %v2017_v59 }
  0xfc   : > { %vm424_vm10 = vmor %vm336_vm3, %vm392_vm14  ;;  %v1454_v25 = vsel %vm2992_vm6, 1.0, %v1857_v23  ;;  %vm566_vm14 = vcmp.eq.s32.totalorder %v537_v24, %v2009_v56  ;;  %vm569_vm6 = vcmp.eq.s32.totalorder %v537_v24, %v2021_v60  ;;  %1321 = vmatpush.bf16.msrb.mxu0 %v1662_v14 }
  0xfd   : > { %vm425_vm5 = vmor %vm337_vm15, %vm393_vm1  ;;  %vm567_vm1 = vcmp.eq.s32.totalorder %v537_v24, %v2014_v58  ;;  %vm2993_vm15 = vnez %v2988_v20  ;;  %v678_v27 = vpack.c.bf16 %v1454_v25, %v1453_v62  ;;  %v1661_v25 = vld [vmem:[%s2846_s4 + $0x20] sm:$0xff] }
  0xfe   : > { %vm510_vm0 = vmor %vm422_vm12, %vm478_vm9  ;;  %v1455_v16 = vsel %vm2993_vm15, 1.0, %v1857_v23  ;;  %vm2994_vm12 = vnez %v2990_v22  ;;  %v2769_v22 = vld [vmem:[%s2844_s2] ss:$0 sm:$0xff] }
  0xff   : > { %vm511_vm8 = vmor %vm423_vm11, %vm479_vm4  ;;  %v1456_v26 = vsel %vm2994_vm12, 1.0, %v1857_v23  ;;  %v786_v34 = vunpack.c.l.b16 %v678_v27  ;;  %v787_v59 = vunpack.c.h.b16 %v678_v27 }
 0x100   : > { %vm512_vm3 = vmor %vm424_vm10, %vm480_vm13  ;;  %v679_v28 = vpack.c.bf16 %v1456_v26, %v1455_v16  ;;  %1322 = vmatpush.bf16.msrb.mxu0 %v1661_v25 }
 0x101   : > { %vm513_vm9 = vmor %vm425_vm5, %vm481_vm2  ;;  %vm1255_vm2 = vcmask 1041409   ;;  %vm1257_vm5 = vcmask 1042434  }
 0x102   : > { %vm598_vm4 = vmor %vm510_vm0, %vm566_vm14  ;;  %v788_v30 = vunpack.c.l.b16 %v679_v28  ;;  %v789_v37 = vunpack.c.h.b16 %v679_v28  ;;  %vm1259_vm0 = vcmask 1043459   ;;  %vm1263_vm14 = vcmask 1045509  }
 0x103   : > { %vm599_vm11 = vmor %vm511_vm8, %vm567_vm1  ;;  %v1457_v56 = vsel %vm598_vm4, 1.0, %v1857_v23  ;;  %vm1261_vm8 = vcmask 1044484   ;;  %vm1267_vm1 = vcmask 1047559  }
 0x104   : > { %vm600_vm13 = vmor %vm512_vm3, %vm568_vm7  ;;  %v1458_v58 = vsel %vm599_vm11, 1.0, %v1857_v23  ;;  %vm1265_vm3 = vcmask 1046534  }
 0x105   : > { %vm601_vm10 = vmor %vm513_vm9, %vm569_vm6  ;;  %v1459_v29 = vsel %vm600_vm13, 1.0, %v1857_v23  ;;  %v680_v31 = vpack.c.bf16 %v1458_v58, %v1457_v56 }
 0x106   : > { %v1460_v32 = vsel %vm601_vm10, 1.0, %v1857_v23 }
 0x107   : > { %v790_v36 = vunpack.c.l.b16 %v680_v31  ;;  %v791_v35 = vunpack.c.h.b16 %v680_v31  ;;  %v681_v60 = vpack.c.bf16 %v1460_v32, %v1459_v29 }
 0x109   : > { %v806_v38 = vpack.c.b16 %v790_v36, %v786_v34  ;;  %v807_v39 = vpack.c.b16 %v791_v35, %v787_v59  ;;  %v792_v33 = vunpack.c.l.b16 %v681_v60  ;;  %v793_v40 = vunpack.c.h.b16 %v681_v60  ;;  %v1660_v35 = vld [vmem:[%s2846_s4 + $0x18] sm:$0xff] }
 0x10a   : > { %1323 = vmatpush.bf16.msrb.mxu0 %v1660_v35 }
 0x10b   : > { %1041 = vmatmul.bf16.gmra.mxu0 %v806_v38  ;;  %1070 = vmatmul.bf16.gmra.mxu1 %v807_v39  ;;  %v808_v41 = vpack.c.b16 %v792_v33, %v788_v30  ;;  %v809_v42 = vpack.c.b16 %v793_v40, %v789_v37  ;;  %v2786_v38 = vld [vmem:[%s2845_s3] sm:$0xff] }
 0x10d   : > { %1099 = vmatmul.bf16.gmra.mxu2 %v808_v41  ;;  %1128 = vmatmul.bf16.gmra.mxu3 %v809_v42 }
 0x146   : > { %v1027_v43 = vpop.f32.mrf.mxu0  ;;  %v1056_v44 = vpop.f32.mrf.mxu1 }
 0x147   : > { %v1057_v6 = vadd.f32 %v1056_v44, %v1027_v43 }
 0x14e   : > { %v1029_v23 = vpop.f32.mrf.mxu0  ;;  %v1058_v45 = vpop.f32.mrf.mxu1 }
 0x14f   : > { %v1059_v3 = vadd.f32 %v1058_v45, %v1029_v23  ;;  %v1659_v45 = vld [vmem:[%s2846_s4 + $0x10] sm:$0xff] }
 0x150   : > { %v1085_v46 = vpop.f32.mrf.mxu2  ;;  %v1114_v47 = vpop.f32.mrf.mxu3  ;;  %1324 = vmatpush.bf16.msrb.mxu0 %v1659_v45 }
 0x151   : > { %v1086_v12 = vadd.f32 %v1085_v46, %v1057_v6 }
 0x153   : > { %v1115_v21 = vadd.f32 %v1114_v47, %v1086_v12 }
 0x155   : > { %v1138_v29 = vadd.f32 %v2769_v22, %v1115_v21 }
 0x157   : > { %v1146_v30 = vmax.f32 %v1138_v29, 0.0 }
 0x158   : > { %v1087_v48 = vpop.f32.mrf.mxu2  ;;  %v1116_v49 = vpop.f32.mrf.mxu3 }
 0x159   : > { %v1088_v7 = vadd.f32 %v1087_v48, %v1059_v3  ;;  %v1155_v44 = vmul.f32 %v2786_v38, %v1146_v30 }
 0x15b   : > { %v1117_v19 = vadd.f32 %v1116_v49, %v1088_v7  ;;  %v1658_v49 = vld [vmem:[%s2846_s4 + $0x8] sm:$0xff] }
 0x15c   : > { %v1032_v50 = vpop.f32.mrf.mxu0  ;;  %v1061_v51 = vpop.f32.mrf.mxu1  ;;  %1325 = vmatpush.bf16.msrb.mxu0 %v1658_v49 }
 0x15d   : > { %v1062_v4 = vadd.f32 %v1061_v51, %v1032_v50  ;;  %v1139_v27 = vadd.f32 %v2769_v22, %v1117_v19  ;;  %v1163_v51 = vrot.slane %v1155_v44, 4 }
 0x15f   : > { %v1147_v36 = vmax.f32 %v1139_v27, 0.0 }
 0x161   : > { %v1156_v33 = vmul.f32 %v2786_v38, %v1147_v36 }
 0x163   : > { %v1169_v47 = vrot.slane %v1156_v33, 4 }
 0x164   : > { %v1034_v54 = vpop.f32.mrf.mxu0  ;;  %v1063_v57 = vpop.f32.mrf.mxu1 }
 0x165   : > { %v1090_v52 = vpop.f32.mrf.mxu2  ;;  %v1119_v53 = vpop.f32.mrf.mxu3  ;;  %v1064_v8 = vadd.f32 %v1063_v57, %v1034_v54 }
 0x166   : > { %v1091_v10 = vadd.f32 %v1090_v52, %v1062_v4  ;;  %v1164_v4 = vmax.f32 %v1155_v44, %v1163_v51 }
 0x168   : > { %v1120_v20 = vadd.f32 %v1119_v53, %v1091_v10 }
 0x16a   : > { %v1140_v58 = vadd.f32 %v2769_v22, %v1120_v20 }
 0x16c   : > { %v1148_v60 = vmax.f32 %v1140_v58, 0.0 }
 0x16d   : > { %v1092_v61 = vpop.f32.mrf.mxu2  ;;  %v1121_v63 = vpop.f32.mrf.mxu3 }
 0x16e   : > { %v1093_v13 = vadd.f32 %v1092_v61, %v1064_v8  ;;  %v1157_v41 = vmul.f32 %v2786_v38, %v1148_v60 }
 0x170   : > { %v1037_v1 = vpop.f32.mrf.mxu0  ;;  %v1066_v2 = vpop.f32.mrf.mxu1  ;;  %v1122_v24 = vadd.f32 %v1121_v63, %v1093_v13  ;;  %v1175_v50 = vrot.slane %v1157_v41, 4  ;;  %v1170_v63 = vmax.f32 %v1156_v33, %v1169_v47  ;;  %v1165_v13 = vrot.slane %v1164_v4, 2 }
 0x171   : > { %v1067_v11 = vadd.f32 %v1066_v2, %v1037_v1  ;;  %v1657_v2 = vld [vmem:[%s2846_s4] sm:$0xff] }
 0x172   : > { %v1141_v31 = vadd.f32 %v2769_v22, %v1122_v24  ;;  %v1176_v3 = vmax.f32 %v1157_v41, %v1175_v50  ;;  %v1171_v9 = vrot.slane %v1170_v63, 2  ;;  %1326 = vmatpush.bf16.msrb.mxu0 %v1657_v2 }
 0x174   : > { %v1149_v37 = vmax.f32 %v1141_v31, 0.0  ;;  %v1177_v12 = vrot.slane %v1176_v3, 2  ;;  %v1172_v20 = vmax.f32 %v1170_v63, %v1171_v9 }
 0x176   : > { %v1158_v23 = vmul.f32 %v2786_v38, %v1149_v37  ;;  %v1178_v25 = vmax.f32 %v1176_v3, %v1177_v12  ;;  %v1173_v29 = vrot.slane %v1172_v20, 1 }
 0x178   : > { %v1095_v55 = vpop.f32.mrf.mxu2  ;;  %v1124_v5 = vpop.f32.mrf.mxu3  ;;  %v1181_v52 = vrot.slane %v1158_v23, 4  ;;  %v1179_v36 = vrot.slane %v1178_v25, 1 }
 0x179   : > { %v1096_v15 = vadd.f32 %v1095_v55, %v1067_v11  ;;  %v1039_v17 = vpop.f32.mrf.mxu0  ;;  %v1068_v18 = vpop.f32.mrf.mxu1 }
 0x17a   : > { %v1069_v62 = vadd.f32 %v1068_v18, %v1039_v17  ;;  %v1182_v55 = vmax.f32 %v1158_v23, %v1181_v52 }
 0x17b   : > { %v1125_v16 = vadd.f32 %v1124_v5, %v1096_v15 }
 0x17c   : > { %v1183_v14 = vrot.slane %v1182_v55, 2 }
 0x17d   : > { %v1142_v34 = vadd.f32 %v2769_v22, %v1125_v16 }
 0x17e   : > { %v1184_v27 = vmax.f32 %v1182_v55, %v1183_v14 }
 0x17f   : > { %v1150_v39 = vmax.f32 %v1142_v34, 0.0 }
 0x180   : > { %v1097_v26 = vpop.f32.mrf.mxu2  ;;  %v1126_v28 = vpop.f32.mrf.mxu3  ;;  %v1185_v35 = vrot.slane %v1184_v27, 1 }
 0x181   : > { %v1098_v56 = vadd.f32 %v1097_v26, %v1069_v62  ;;  %v1159_v46 = vmul.f32 %v2786_v38, %v1150_v39  ;;  %v1166_v26 = vmax.f32 %v1164_v4, %v1165_v13  ;;  %v1174_v39 = vmax.f32 %v1172_v20, %v1173_v29 }
 0x182   : > { %v1186_v44 = vmax.f32 %v1184_v27, %v1185_v35 }
 0x183   : > { %v1127_v32 = vadd.f32 %v1126_v28, %v1098_v56  ;;  %v1187_v54 = vrot.slane %v1159_v46, 4  ;;  %v1212_v47 = vpack.c.bf16 %v1174_v39, %v1174_v39 }
 0x184   : > { %v1214_v52 = vpack.c.bf16 %v1186_v44, %v1186_v44 }
 0x185   : > { %v1143_v59 = vadd.f32 %v2769_v22, %v1127_v32  ;;  %v1188_v6 = vmax.f32 %v1159_v46, %v1187_v54 }
 0x186   : > { %v1250_v2 = vunpack.c.l.b16 %v1214_v52 }
 0x187   : > { %v1151_v40 = vmax.f32 %v1143_v59, 0.0  ;;  %v1189_v18 = vrot.slane %v1188_v6, 2  ;;  %v1167_v59 = vrot.slane %v1166_v26, 1 }
 0x188   : > { %v1042_v42 = vpop.f32.mrf.mxu0  ;;  %v1071_v43 = vpop.f32.mrf.mxu1 }
 0x189   : > { %v1160_v48 = vmul.f32 %v2786_v38, %v1151_v40  ;;  %v1072_v53 = vadd.f32 %v1071_v43, %v1042_v42  ;;  %v1190_v28 = vmax.f32 %v1188_v6, %v1189_v18  ;;  %v1180_v42 = vmax.f32 %v1178_v25, %v1179_v36  ;;  %v1751_v18 = vld [vmem:[%s2847_s5] ss:$0 sm:$0xff] }
 0x18a   : > { %v1168_v43 = vmax.f32 %v1166_v26, %v1167_v59 }
 0x18b   : > { %v1193_v0 = vrot.slane %v1160_v48, 4  ;;  %v1191_v37 = vrot.slane %v1190_v28, 1  ;;  %v1213_v49 = vpack.c.bf16 %v1180_v42, %v1180_v42 }
 0x18c   : > { %v1211_v51 = vpack.c.bf16 %v1168_v43, %v1168_v43 }
 0x18d   : > { %v1194_v10 = vmax.f32 %v1160_v48, %v1193_v0  ;;  %v1192_v46 = vmax.f32 %v1190_v28, %v1191_v37 }
 0x18f   : > { %v1195_v21 = vrot.slane %v1194_v10, 2  ;;  %v1215_v54 = vpack.c.bf16 %v1192_v46, %v1192_v46 }
 0x190   : > { %v1100_v57 = vpop.f32.mrf.mxu2  ;;  %v1129_v61 = vpop.f32.mrf.mxu3 }
 0x191   : > { %v1101_v1 = vadd.f32 %v1100_v57, %v1072_v53  ;;  %v1044_v7 = vpop.f32.mrf.mxu0  ;;  %v1073_v8 = vpop.f32.mrf.mxu1  ;;  %v1196_v31 = vmax.f32 %v1194_v10, %v1195_v21  ;;  %v1248_v57 = vunpack.c.l.b16 %v1212_v47  ;;  %v1251_v4 = vunpack.c.l.b16 %v1215_v54 }
 0x192   : > { %v1074_v17 = vadd.f32 %v1073_v8, %v1044_v7 }
 0x193   : > { %v1130_v5 = vadd.f32 %v1129_v61, %v1101_v1  ;;  %v1197_v33 = vrot.slane %v1196_v31, 1  ;;  %v1247_v1 = vunpack.c.l.b16 %v1211_v51 }
 0x195   : > { %v1144_v11 = vadd.f32 %v2769_v22, %v1130_v5  ;;  %v1198_v48 = vmax.f32 %v1196_v31, %v1197_v33  ;;  %v1256_v55 = vsel %vm1255_vm2, %v1248_v57, %v1247_v1 }
 0x197   : > { %v1152_v15 = vmax.f32 %v1144_v11, 0.0  ;;  %v1216_v61 = vpack.c.bf16 %v1198_v48, %v1198_v48 }
 0x198   : > { %v1102_v19 = vpop.f32.mrf.mxu2  ;;  %v1131_v16 = vpop.f32.mrf.mxu3 }
 0x199   : > { %v1161_v24 = vmul.f32 %v2786_v38, %v1152_v15  ;;  %v1103_v62 = vadd.f32 %v1102_v19, %v1074_v17  ;;  %v1252_v5 = vunpack.c.l.b16 %v1216_v61 }
 0x19b   : > { %v1199_v56 = vrot.slane %v1161_v24, 4  ;;  %v1132_v58 = vadd.f32 %v1131_v16, %v1103_v62 }
 0x19d   : > { %v1200_v32 = vmax.f32 %v1161_v24, %v1199_v56  ;;  %v1145_v34 = vadd.f32 %v2769_v22, %v1132_v58 }
 0x19f   : > { %v1201_v60 = vrot.slane %v1200_v32, 2  ;;  %v1153_v30 = vmax.f32 %v1145_v34, 0.0 }
 0x1a1   : > { %v1202_v40 = vmax.f32 %v1200_v32, %v1201_v60  ;;  %v1162_v41 = vmul.f32 %v2786_v38, %v1153_v30  ;;  %v1249_v38 = vunpack.c.l.b16 %v1213_v49 }
 0x1a3   : > { %v1203_v23 = vrot.slane %v1202_v40, 1  ;;  %v1205_v45 = vrot.slane %v1162_v41, 4  ;;  %v1258_v8 = vsel %vm1257_vm5, %v1249_v38, %v1256_v55 }
 0x1a4   : > { %v1260_v10 = vsel %vm1259_vm0, %v1250_v2, %v1258_v8 }
 0x1a5   : > { %v1206_v22 = vmax.f32 %v1162_v41, %v1205_v45  ;;  %v1204_v50 = vmax.f32 %v1202_v40, %v1203_v23  ;;  %v1262_v11 = vsel %vm1261_vm8, %v1251_v4, %v1260_v10 }
 0x1a6   : > { %v1264_v13 = vsel %vm1263_vm14, %v1252_v5, %v1262_v11 }
 0x1a7   : > { %v1207_v53 = vrot.slane %v1206_v22, 2  ;;  %v1217_v0 = vpack.c.bf16 %v1204_v50, %v1204_v50 }
 0x1a9   : > { %v1208_v63 = vmax.f32 %v1206_v22, %v1207_v53  ;;  %v1253_v7 = vunpack.c.l.b16 %v1217_v0 }
 0x1ab   : > { %v1209_v3 = vrot.slane %v1208_v63, 1  ;;  %v1266_v14 = vsel %vm1265_vm3, %v1253_v7, %v1264_v13 }
 0x1ad   : > { %v1210_v6 = vmax.f32 %v1208_v63, %v1209_v3 }
 0x1af   : > { %v1218_v9 = vpack.c.bf16 %v1210_v6, %v1210_v6 }
 0x1b1   : > { %v1254_v12 = vunpack.c.l.b16 %v1218_v9 }
 0x1b3   : > { %v1268_v15 = vsel %vm1267_vm1, %v1254_v12, %v1266_v14 }
 0x1b4   : > { %v1269_v17 = vpack.c.b16 %v1268_v15, %v1268_v15 }
 0x1b6   : > { %1327 = vmatmul.bf16.vlgmr.msrb.gmra.mxu0 %v1269_v17 }
 0x233   : > { %v1328_v19 = vpop.f32.mrf.mxu0 }
 0x234   : > { %v1329_v20 = vadd.f32 %v1751_v18, %v1328_v19 }
 0x236   : > { %1332 = vst [vmem:[%s262_s19] sm:$0xff] %v1329_v20 }
 0x237   : > { %1809 = shalt.err (!%p1806_p8)
}
 0x238   : > { %1669 = dma.vmem_to_hbm [thread:$0]  (%p1931_p5), %s1347_s20, 128, %s1349_s26, %s1334_s25  }
 0x23b   : > { %v1330_v21 = vpop.f32.mrf.mxu0 }
 0x23c PF: > { %p1681_p9 = scmp.ge.s32.totalorder %s1848_s24, 2  ;;  %s1360_s11 = sand.u32 1, %s1836_s21  }
 0x23d   : > { %s1361_s14 = scalar_lea.sflag [#allocation4], %s1360_s11 }
 0x23e   : > { %p1676_p10 = pnand %p1681_p9, %p1935_p6 }
 0x240   : > { %p1677_p11 = pneg %p1676_p10 }
 0x242   : > { %1831 = dma.done.wait (%p1677_p11), %s1361_s14, 128  }
 0x243   : > { %1833 = vsyncadd (%p1677_p11), %s1361_s14, 4294967168  ;;  %p17_p12 = scmp.ge.s32.totalorder %s1918_s27, 4   ;;  %s2995_s21 = smov %s1840_s22 }
 0x244   : > { %s2996_s22 = smov %s1844_s23  ;;  %s2997_s23 = smov %s1929_s30 }
 0x245   : > { %s2998_s24 = smov %s1918_s27  ;;  %19 = sbr.rel (!%p17_p12) target bundleno = 4 (0x4), region = 84 }
 0x24a   :  { %1367 = vsyncpa [#allocation3], 1 }
 0x24b   :  { %1369 = vsyncpa [#allocation3 + $0x1], 1 }
 0x24c   :  { %1370 = vsyncpa [#allocation4], 1 }
 0x24d   :  { %1372 = vsyncpa [#allocation4 + $0x1], 1 }

</bundles_post_ra>
